<compile_context>
chip_gen: v6e
topology: v6e:2x2x1
jax: 0.10.0
libtpu: 0.0.40
codegen_flags: <defaults>
</compile_context>

<pallas_src>
import functools

import jax
import jax.numpy as jnp
from jax.experimental import pallas as pl
from jax.experimental.pallas import tpu as pltpu

# Below this the identity is best handled by XLA / by simply returning x.
_MULTI_DMA_MIN_BYTES = 4 << 20   # only split the copy above ~4 MiB
_SLICE_TARGET_BYTES = 4 << 20    # aim ~4 MiB per concurrent DMA slice
_MAX_SLICES = 8


def _make_identity_copy_kernel(splits):
    """Build an HBM->HBM copy kernel over static (start, size) leading-dim slices.

    splits == None  -> single full-ref copy (also covers 0-d arrays).
    """

    def kernel(x_hbm, o_hbm, sem):
        copies = []
        if splits is None:
            cp = pltpu.make_async_copy(x_hbm, o_hbm, sem.at[0])
            cp.start()
            copies.append(cp)
        else:
            for i, (start, size) in enumerate(splits):
                cp = pltpu.make_async_copy(
                    x_hbm.at[pl.ds(start, size)],
                    o_hbm.at[pl.ds(start, size)],
                    sem.at[i],
                )
                cp.start()
                copies.append(cp)
        # All DMAs are in flight; now drain them.
        for cp in copies:
            cp.wait()

    return kernel


def _pallas_identity_copy(x: jax.Array) -> jax.Array:
    """Fresh-buffer identity: y = x, as (possibly concurrent) HBM->HBM DMAs."""
    nbytes = x.size * x.dtype.itemsize

    # Decide the (static) slice plan along the leading dim.
    if x.ndim == 0 or x.shape[0] <= 1 or nbytes < _MULTI_DMA_MIN_BYTES:
        splits = None if x.ndim == 0 else ((0, x.shape[0]),)
        n_sems = 1
    else:
        lead = x.shape[0]
        want = max(1, nbytes // _SLICE_TARGET_BYTES)
        n_slices = int(min(_MAX_SLICES, lead, want))
        chunk = pl.cdiv(lead, n_slices)
        splits = []
        start = 0
        while start < lead:
            size = min(chunk, lead - start)
            splits.append((start, size))
            start += size
        splits = tuple(splits)
        n_sems = len(splits)

    kernel = _make_identity_copy_kernel(splits)

    return pl.pallas_call(
        kernel,
        out_shape=jax.ShapeDtypeStruct(x.shape, x.dtype),
        in_specs=[pl.BlockSpec(memory_space=pl.ANY)],   # raw HBM ref, no auto-DMA
        out_specs=pl.BlockSpec(memory_space=pl.ANY),    # raw HBM ref, no auto-DMA
        scratch_shapes=[pltpu.SemaphoreType.DMA((n_sems,))],
        cost_estimate=pl.CostEstimate(
            flops=0, transcendentals=0, bytes_accessed=2 * nbytes),
    )(x)


def talos_module_forward(x: jax.Array, *, fresh_buffer: bool = False) -> jax.Array:
    """Pallas/JAX implementation of TalosModule.forward (identity).

    Default path is a literal pass-through (`return x`) — the module's forward
    does no compute, so the fastest kernel is no kernel at all.  Set
    `fresh_buffer=True` if a distinct output buffer is required; that path runs
    a Pallas HBM->HBM copy (multi-DMA for large tensors).
    """
    if not fresh_buffer:
        return x
    if x.size == 0:
        return x  # nothing to copy
    return _pallas_identity_copy(x)


if __name__ == "__main__":
    # TalosModule has no parameters; forward is identity, so no weights to init.
    key = jax.random.PRNGKey(0)
    x = jax.random.normal(key, (2, 4, 16, 16), dtype=jnp.float32)  # NCHW

    # 1) Default (zero-cost) path: literal identity.
    y_fast = talos_module_forward(x)
    jax.block_until_ready(y_fast)
    assert y_fast.shape == x.shape and y_fast.dtype == x.dtype
    assert bool(jnp.all(y_fast == x))

    # 2) Fresh-buffer path: exercises the Pallas HBM->HBM copy kernel once.
    y = talos_module_forward(x, fresh_buffer=True)
    jax.block_until_ready(y)
    assert y.shape == x.shape and y.dtype == x.dtype
    assert bool(jnp.all(y == x))

    print("KERNEL_OK")
</pallas_src>

<mosaic_0001>
module attributes {stable_mosaic.version = 11 : i64} {
  func.func @kernel(%arg0: memref<2x4x16x16xf32, #tpu.memory_space<any>>, %arg1: memref<2x4x16x16xf32, #tpu.memory_space<any>>, %arg2: memref<1x!tpu.dma_semaphore, #tpu.memory_space<semaphore_mem>>) attributes {dimension_semantics = [], scalar_prefetch = 0 : i64, scratch_operands = 1 : i64, tpu.core_type = #tpu.core_type<tc>} {
    %c0_i32 = arith.constant 0 : i32
    %c0_i32_0 = arith.constant 0 : i32
    %c0_i32_1 = arith.constant 0 : i32
    %c0_i32_2 = arith.constant 0 : i32
    %c0_i32_3 = arith.constant 0 : i32
    %0 = tpu.memref_slice %arg0[%c0_i32_0, %c0_i32_1, %c0_i32_2, %c0_i32_3] : memref<2x4x16x16xf32, #tpu.memory_space<any>> -> memref<2x4x16x16xf32, #tpu.memory_space<any>>
    %c0_i32_4 = arith.constant 0 : i32
    %c0_i32_5 = arith.constant 0 : i32
    %c0_i32_6 = arith.constant 0 : i32
    %c0_i32_7 = arith.constant 0 : i32
    %1 = tpu.memref_slice %arg1[%c0_i32_4, %c0_i32_5, %c0_i32_6, %c0_i32_7] : memref<2x4x16x16xf32, #tpu.memory_space<any>> -> memref<2x4x16x16xf32, #tpu.memory_space<any>>
    %2 = tpu.memref_slice %arg2[%c0_i32] : memref<1x!tpu.dma_semaphore, #tpu.memory_space<semaphore_mem>> -> memref<1x!tpu.dma_semaphore, #tpu.memory_space<semaphore_mem>>
    %3 = tpu.memref_squeeze %2 : memref<1x!tpu.dma_semaphore, #tpu.memory_space<semaphore_mem>> -> memref<!tpu.dma_semaphore, #tpu.memory_space<semaphore_mem>>
    tpu.enqueue_dma source(%0 : memref<2x4x16x16xf32, #tpu.memory_space<any>>) target(%1 : memref<2x4x16x16xf32, #tpu.memory_space<any>>) target_semaphore(%3 : memref<!tpu.dma_semaphore, #tpu.memory_space<semaphore_mem>>)
    %c0_i32_8 = arith.constant 0 : i32
    %c0_i32_9 = arith.constant 0 : i32
    %c0_i32_10 = arith.constant 0 : i32
    %c0_i32_11 = arith.constant 0 : i32
    %c0_i32_12 = arith.constant 0 : i32
    %4 = tpu.memref_slice %arg0[%c0_i32_9, %c0_i32_10, %c0_i32_11, %c0_i32_12] : memref<2x4x16x16xf32, #tpu.memory_space<any>> -> memref<2x4x16x16xf32, #tpu.memory_space<any>>
    %c0_i32_13 = arith.constant 0 : i32
    %c0_i32_14 = arith.constant 0 : i32
    %c0_i32_15 = arith.constant 0 : i32
    %c0_i32_16 = arith.constant 0 : i32
    %5 = tpu.memref_slice %arg1[%c0_i32_13, %c0_i32_14, %c0_i32_15, %c0_i32_16] : memref<2x4x16x16xf32, #tpu.memory_space<any>> -> memref<2x4x16x16xf32, #tpu.memory_space<any>>
    %6 = tpu.memref_slice %arg2[%c0_i32_8] : memref<1x!tpu.dma_semaphore, #tpu.memory_space<semaphore_mem>> -> memref<1x!tpu.dma_semaphore, #tpu.memory_space<semaphore_mem>>
    %7 = tpu.memref_squeeze %6 : memref<1x!tpu.dma_semaphore, #tpu.memory_space<semaphore_mem>> -> memref<!tpu.dma_semaphore, #tpu.memory_space<semaphore_mem>>
    tpu.wait_dma2 semaphore(%7 : memref<!tpu.dma_semaphore, #tpu.memory_space<semaphore_mem>>) src(%4 : memref<2x4x16x16xf32, #tpu.memory_space<any>>) dst(%5 : memref<2x4x16x16xf32, #tpu.memory_space<any>>)
    return
  }
}

</mosaic_0001>

<bundles_post_ra>
// kernel: tpu_custom_call.1
= control target key start
LH: loop header
LB: loop body
LE: loop exit
PB: predicated region body
PF: predicated region fallthrough
CT: control target
= control target key end

     0   :  { %s30_s6 = smov [#allocation2]   ;;  %s31_s7 = smov 131072   ;;  %s49_s0 = inlined_call_operand.hbm [shape: f32[2,4,16,16], index: 0, kind: input, shape index: {}]   ;;  %s50_s1 = inlined_call_operand.hbm [shape: f32[2,4,16,16], index: 1, kind: output, shape index: {}]  }
   0x1   :  { %s32_s8 = smov 0  }
   0x2   :  { %12 = dma.general %s49_s0, 2048, %s50_s1, %s30_s6, %s31_s7, [#allocation4], %s32_s8, 0  }
   0x3   :  { %28 = dma.done.wait [#allocation2], 2048 }
   0x4   :  { %29 = vsyncadd [#allocation2], 4294965248 }
   0x5   :  { %18 = vsyncmov [#allocation2] }
   0x8   :  { %s19_s13 = vpop.sfrf %18 }
   0x9   :  { %p24_p0 = scmp.ne.s32.totalorder %s19_s13, 0 }
   0xb   :  { %23 = shalt.err (%p24_p0)  }

</bundles_post_ra>
